<compile_context>
chip_gen: v6e
topology: v6e:2x2x1
jax: 0.10.0
libtpu: 0.0.40
codegen_flags: <defaults>
</compile_context>

<pallas_src>
import jax
import jax.numpy as jnp
from jax.experimental import pallas as pl
from jax.experimental.pallas import tpu as pltpu

LANE = 128


def _round_up(n, m):
    return (n + m - 1) // m * m


# ---------------------------------------------------------------------------
# Kernel: three MXU matmuls + two 2-op polynomial activations, all VMEM-resident.
# ---------------------------------------------------------------------------
def _mlp_kernel(x_ref, w1_ref, b1_ref, w2_ref, b2_ref, w3t_ref, b3t_ref, ot_ref):
    # x streams in as f32 and is cast to bf16 here (no separate XLA cast pass
    # over HBM; kernel reads 4*D B/row instead of 4*D + 2*D + 2*D).
    x = x_ref[...].astype(w1_ref.dtype)                                  # (TB, D) bf16
    h = jnp.dot(x, w1_ref[...], preferred_element_type=jnp.float32) + b1_ref[...]
    # poly(t) = 0.5*t + 0.25*t^2 = 0.25*t*(t+2); the 0.25 is folded into the
    # next layer's weights, so only t*(t+2) is evaluated here.
    p = (h * (h + 2.0)).astype(w2_ref.dtype)
    h = jnp.dot(p, w2_ref[...], preferred_element_type=jnp.float32) + b2_ref[...]
    p = (h * (h + 2.0)).astype(w3t_ref.dtype)                            # 0.25 folded into w3t
    # fc3 emitted transposed: out[c, b] = sum_k w3t[c, k] * p[b, k] + b3t[c].
    # Classes sit on sublanes (only round_up(C,8) of them), batch stays on
    # lanes -> lane-dense, ~8x smaller HBM writeback than a 128-lane f32 row.
    ot_ref[...] = (
        jnp.einsum('ck,bk->cb', w3t_ref[...], p,
                   preferred_element_type=jnp.float32)
        + b3t_ref[...])


# ---------------------------------------------------------------------------
# Host-side parameter preparation: fold BN + poly constants, pad, cast.
# ---------------------------------------------------------------------------
def prepare_params(raw, compute_dtype=jnp.bfloat16, eps=1e-5):
    """Fold eval-mode BN and the 0.25 poly constant into the Linears (exact, in
    f32), store fc3 transposed with the class dim padded to a multiple of 8,
    then cast the matmul weights to bf16."""
    (w1, b1, g1, be1, m1, v1,
     w2, b2, g2, be2, m2, v2,
     w3, b3) = raw

    s1 = g1 / jnp.sqrt(v1 + eps)
    t1 = be1 - m1 * s1
    s2 = g2 / jnp.sqrt(v2 + eps)
    t2 = be2 - m2 * s2

    # bn1 ∘ fc1
    w1f = w1 * s1
    b1f = b1 * s1 + t1
    # bn2 ∘ fc2, plus the 0.25 from the first poly activation
    w2f = 0.25 * w2 * s2
    b2f = b2 * s2 + t2
    # fc3, plus the 0.25 from the second poly activation -- stored TRANSPOSED
    # (classes, 128) so the kernel writes a (classes, batch) block directly.
    n = w3.shape[1]
    c_pad = _round_up(n, 8)
    w3t = jnp.pad((0.25 * w3).T, ((0, c_pad - n), (0, 0)))      # (c_pad, 128)
    b3t = jnp.pad(b3.T, ((0, c_pad - n), (0, 0)))                # (c_pad, 1)

    cast = lambda w: w.astype(compute_dtype)
    return (cast(w1f), b1f.astype(jnp.float32),
            cast(w2f), b2f.astype(jnp.float32),
            cast(w3t), b3t.astype(jnp.float32))


# ---------------------------------------------------------------------------
# Batch-tile selection.
# ---------------------------------------------------------------------------
def _choose_tile_b(B, preferred):
    """Pick the batch tile.
      * Single-tile path: block == full array dims, so any B works directly.
        Large, nicely-divisible batches are split in two so the "parallel"
        grid axis feeds both v7x TensorCores (harmless on v5e/v6e).
      * Multi-tile path: tile must be a multiple of 128 (lane-dense output
        blocks); prefer large tiles (amortize ~0.35us/grid-step), low padding
        waste, and an even number of grid steps (v7x TC balance)."""
    preferred = max(LANE, (preferred // LANE) * LANE)
    if B <= preferred:
        if B >= 512 and B % 256 == 0:
            return B // 2                      # 2 grid steps, still lane-dense
        return B                               # one tile covers the batch
    cands = [t for t in (preferred, preferred // 2, preferred // 4, preferred // 8)
             if t >= LANE] or [preferred]

    def cost(tb):
        steps = pl.cdiv(B, tb)
        waste = steps * tb - B                 # masked/garbage rows in last tile
        return (waste + 64 * steps, -tb, steps % 2)

    return min(cands, key=cost)


# ---------------------------------------------------------------------------
# Pallas wrapper.
# ---------------------------------------------------------------------------
def fhe_mlp_forward(x, prepared, num_classes, tile_b=1024):
    """x: (B, input_dim) float32.  Returns (B, num_classes) float32.
    tile_b: preferred batch tile; 512-2048 is a good range on v5e/v6e/v7x."""
    w1, b1, w2, b2, w3t, b3t = prepared
    B, D = x.shape
    c_pad = w3t.shape[0]

    tb = _choose_tile_b(B, tile_b)
    nb = pl.cdiv(B, tb)

    # Weights/biases: constant index_map -> fetched once, VMEM-resident.
    const = lambda a: pl.BlockSpec(a.shape, lambda i: (0,) * a.ndim)

    cost = pl.CostEstimate(
        flops=int(2 * B * (D * 256 + 256 * 128 + 128 * c_pad)),
        transcendentals=0,
        bytes_accessed=int(x.size * x.dtype.itemsize
                           + c_pad * B * 4
                           + sum(int(a.size) * a.dtype.itemsize for a in prepared)),
    )

    out_t = pl.pallas_call(
        _mlp_kernel,
        out_shape=jax.ShapeDtypeStruct((c_pad, B), jnp.float32),
        grid_spec=pltpu.PrefetchScalarGridSpec(
            num_scalar_prefetch=0,
            grid=(nb,),
            in_specs=[
                pl.BlockSpec((tb, D), lambda i: (i, 0)),   # x streams per tile (f32)
                const(w1), const(b1),
                const(w2), const(b2),
                const(w3t), const(b3t),
            ],
            out_specs=pl.BlockSpec((c_pad, tb), lambda i: (0, i)),
        ),
        compiler_params=pltpu.CompilerParams(
            dimension_semantics=("parallel",)),   # 2-TC sharding on v7x
        cost_estimate=cost,
    )(x, w1, b1, w2, b2, w3t, b3t)

    # (classes, B) -> (B, classes); tiny array, cheap wrapper transpose+slice.
    return out_t[:num_classes, :].T


# ---------------------------------------------------------------------------
# Parameter init matching the PyTorch module (xavier_uniform weights, zero bias,
# eval-mode BN; non-identity BN stats here so the host-side fold is exercised).
# ---------------------------------------------------------------------------
def _xavier_uniform(key, fan_in, fan_out):
    limit = (6.0 / (fan_in + fan_out)) ** 0.5
    return jax.random.uniform(key, (fan_in, fan_out), jnp.float32, -limit, limit)


def init_raw_params(key, input_dim, num_classes):
    ks = jax.random.split(key, 11)
    w1 = _xavier_uniform(ks[0], input_dim, 256)
    b1 = jnp.zeros((1, 256), jnp.float32)
    w2 = _xavier_uniform(ks[1], 256, 128)
    b2 = jnp.zeros((1, 128), jnp.float32)
    w3 = _xavier_uniform(ks[2], 128, num_classes)
    b3 = jnp.zeros((1, num_classes), jnp.float32)

    def bn_stats(kg, kb, km, kv, dim):
        gamma = 1.0 + 0.1 * jax.random.normal(kg, (1, dim), jnp.float32)
        beta = 0.1 * jax.random.normal(kb, (1, dim), jnp.float32)
        mean = 0.1 * jax.random.normal(km, (1, dim), jnp.float32)
        var = 1.0 + 0.2 * jax.random.uniform(kv, (1, dim), jnp.float32)
        return gamma, beta, mean, var

    g1, be1, m1, v1 = bn_stats(ks[3], ks[4], ks[5], ks[6], 256)
    g2, be2, m2, v2 = bn_stats(ks[7], ks[8], ks[9], ks[10], 128)

    return (w1, b1, g1, be1, m1, v1, w2, b2, g2, be2, m2, v2, w3, b3)


# ---------------------------------------------------------------------------
# References.
# ---------------------------------------------------------------------------
def _reference_module(x, raw, eps=1e-5):
    """Plain-JAX f32, unfolded — mirrors the PyTorch forward (eval-mode BN)."""
    (w1, b1, g1, be1, m1, v1, w2, b2, g2, be2, m2, v2, w3, b3) = raw
    poly = lambda h: 0.5 * h + 0.25 * h * h
    bn = lambda h, g, be, m, v: (h - m) / jnp.sqrt(v + eps) * g + be
    h = poly(bn(x @ w1 + b1, g1, be1, m1, v1))
    h = poly(bn(h @ w2 + b2, g2, be2, m2, v2))
    return h @ w3 + b3


def _reference_prepared(x, prepared, num_classes):
    """Same folded/bf16-operand math as the kernel, f32 accumulation (tight check)."""
    w1, b1, w2, b2, w3t, b3t = prepared
    up = lambda a: a.astype(jnp.float32)
    h = jnp.dot(up(x.astype(w1.dtype)), up(w1)) + b1
    p = up((h * (h + 2.0)).astype(w2.dtype))
    h = jnp.dot(p, up(w2)) + b2
    p = up((h * (h + 2.0)).astype(w3t.dtype))
    out_t = jnp.einsum('ck,bk->cb', up(w3t), p) + b3t
    return out_t[:num_classes, :].T


if __name__ == "__main__":
    key = jax.random.PRNGKey(0)
    k_x, k_p, k_x2 = jax.random.split(key, 3)

    batch, input_dim, num_classes = 8, 64, 10
    x = jax.random.normal(k_x, (batch, input_dim), jnp.float32)
    raw = init_raw_params(k_p, input_dim, num_classes)
    prepared = prepare_params(raw)

    # --- small single-tile case ---
    out = jax.block_until_ready(fhe_mlp_forward(x, prepared, num_classes))
    assert out.shape == (batch, num_classes)

    # Tight check: kernel == folded/bf16-operand reference (f32 accumulation).
    ref_tight = _reference_prepared(x, prepared, num_classes)
    assert jnp.allclose(out, ref_tight, atol=1e-3, rtol=1e-3), (
        float(jnp.max(jnp.abs(out - ref_tight))))

    # Semantic check: close to the full-f32 PyTorch-equivalent module math.
    ref_module = _reference_module(x, raw)
    assert jnp.allclose(out, ref_module, atol=0.1, rtol=0.1), (
        float(jnp.max(jnp.abs(out - ref_module))))

    # --- multi-tile case with a partial (masked) last block ---
    batch2 = 272
    x2 = jax.random.normal(k_x2, (batch2, input_dim), jnp.float32)
    out2 = jax.block_until_ready(
        fhe_mlp_forward(x2, prepared, num_classes, tile_b=128))
    assert out2.shape == (batch2, num_classes)
    ref2 = _reference_prepared(x2, prepared, num_classes)
    assert jnp.allclose(out2, ref2, atol=1e-3, rtol=1e-3), (
        float(jnp.max(jnp.abs(out2 - ref2))))

    print("KERNEL_OK")
</pallas_src>

<mosaic_0001>
module attributes {stable_mosaic.version = 11 : i64} {
  func.func @_mlp_kernel(%arg0: i32, %arg1: memref<8x64xf32, #tpu.memory_space<vmem>>, %arg2: memref<64x256xbf16, #tpu.memory_space<vmem>>, %arg3: memref<1x256xf32, #tpu.memory_space<vmem>>, %arg4: memref<256x128xbf16, #tpu.memory_space<vmem>>, %arg5: memref<1x128xf32, #tpu.memory_space<vmem>>, %arg6: memref<16x128xbf16, #tpu.memory_space<vmem>>, %arg7: memref<16x1xf32, #tpu.memory_space<vmem>>, %arg8: memref<16x8xf32, #tpu.memory_space<vmem>>) attributes {dimension_semantics = [#tpu.dimension_semantics<parallel>], iteration_bounds = array<i64: 1>, scalar_prefetch = 0 : i64, scratch_operands = 0 : i64, tpu.core_type = #tpu.core_type<tc>, window_params = [{transform_indices = @transform_0, window_bounds = array<i64: 8, 64>}, {pipeline_mode = #tpu.pipeline_mode<synchronous>, transform_indices = @transform_1, window_bounds = array<i64: 64, 256>}, {pipeline_mode = #tpu.pipeline_mode<synchronous>, transform_indices = @transform_2, window_bounds = array<i64: 1, 256>}, {pipeline_mode = #tpu.pipeline_mode<synchronous>, transform_indices = @transform_3, window_bounds = array<i64: 256, 128>}, {pipeline_mode = #tpu.pipeline_mode<synchronous>, transform_indices = @transform_4, window_bounds = array<i64: 1, 128>}, {pipeline_mode = #tpu.pipeline_mode<synchronous>, transform_indices = @transform_5, window_bounds = array<i64: 16, 128>}, {pipeline_mode = #tpu.pipeline_mode<synchronous>, transform_indices = @transform_6, window_bounds = array<i64: 16, 1>}, {transform_indices = @transform_7, window_bounds = array<i64: 16, 8>}]} {
    %c0 = arith.constant 0 : index
    %c0_0 = arith.constant 0 : index
    %0 = vector.load %arg1[%c0, %c0_0] : memref<8x64xf32, #tpu.memory_space<vmem>>, vector<8x64xf32>
    %1 = arith.truncf %0 : vector<8x64xf32> to vector<8x64xbf16>
    %c0_1 = arith.constant 0 : index
    %c0_2 = arith.constant 0 : index
    %2 = vector.load %arg2[%c0_1, %c0_2] : memref<64x256xbf16, #tpu.memory_space<vmem>>, vector<64x256xbf16>
    %cst = arith.constant dense<0.000000e+00> : vector<8x256xf32>
    %3 = tpu.matmul %1, %2, %cst {dimension_numbers = #tpu.dot_dimension_numbers<[1], [0], [0], [1], [0, 0, 1, 1], [], []>} : vector<8x64xbf16>, vector<64x256xbf16>, vector<8x256xf32> -> vector<8x256xf32>
    %c0_3 = arith.constant 0 : index
    %c0_4 = arith.constant 0 : index
    %4 = vector.load %arg3[%c0_3, %c0_4] : memref<1x256xf32, #tpu.memory_space<vmem>>, vector<1x256xf32>
    %5 = vector.broadcast %4 : vector<1x256xf32> to vector<8x256xf32>
    %6 = arith.addf %3, %5 : vector<8x256xf32>
    %cst_5 = arith.constant 2.000000e+00 : f32
    %7 = vector.broadcast %cst_5 : f32 to vector<8x256xf32>
    %8 = arith.addf %6, %7 : vector<8x256xf32>
    %9 = arith.mulf %6, %8 : vector<8x256xf32>
    %10 = arith.truncf %9 : vector<8x256xf32> to vector<8x256xbf16>
    %c0_6 = arith.constant 0 : index
    %c0_7 = arith.constant 0 : index
    %11 = vector.load %arg4[%c0_6, %c0_7] : memref<256x128xbf16, #tpu.memory_space<vmem>>, vector<256x128xbf16>
    %cst_8 = arith.constant dense<0.000000e+00> : vector<8x128xf32>
    %12 = tpu.matmul %10, %11, %cst_8 {dimension_numbers = #tpu.dot_dimension_numbers<[1], [0], [0], [1], [0, 0, 1, 1], [], []>} : vector<8x256xbf16>, vector<256x128xbf16>, vector<8x128xf32> -> vector<8x128xf32>
    %c0_9 = arith.constant 0 : index
    %c0_10 = arith.constant 0 : index
    %13 = vector.load %arg5[%c0_9, %c0_10] : memref<1x128xf32, #tpu.memory_space<vmem>>, vector<1x128xf32>
    %14 = vector.broadcast %13 : vector<1x128xf32> to vector<8x128xf32>
    %15 = arith.addf %12, %14 : vector<8x128xf32>
    %cst_11 = arith.constant 2.000000e+00 : f32
    %16 = vector.broadcast %cst_11 : f32 to vector<8x128xf32>
    %17 = arith.addf %15, %16 : vector<8x128xf32>
    %18 = arith.mulf %15, %17 : vector<8x128xf32>
    %19 = arith.truncf %18 : vector<8x128xf32> to vector<8x128xbf16>
    %c0_12 = arith.constant 0 : index
    %c0_13 = arith.constant 0 : index
    %20 = vector.load %arg6[%c0_12, %c0_13] : memref<16x128xbf16, #tpu.memory_space<vmem>>, vector<16x128xbf16>
    "tpu.trace_start"() <{level = 10 : i32, message = "ck,bk->cb"}> : () -> ()
    %cst_14 = arith.constant dense<0.000000e+00> : vector<16x8xf32>
    %21 = tpu.matmul %20, %19, %cst_14 {dimension_numbers = #tpu.dot_dimension_numbers<[1], [1], [0], [0], [0, 0, 1, 0], [], []>} : vector<16x128xbf16>, vector<8x128xbf16>, vector<16x8xf32> -> vector<16x8xf32>
    "tpu.trace_stop"() : () -> ()
    %c0_15 = arith.constant 0 : index
    %c0_16 = arith.constant 0 : index
    %22 = vector.load %arg7[%c0_15, %c0_16] : memref<16x1xf32, #tpu.memory_space<vmem>>, vector<16x1xf32>
    %23 = vector.broadcast %22 : vector<16x1xf32> to vector<16x8xf32>
    %24 = arith.addf %21, %23 : vector<16x8xf32>
    %c0_17 = arith.constant 0 : index
    %c0_18 = arith.constant 0 : index
    %25 = vector.load %arg8[%c0_17, %c0_18] : memref<16x8xf32, #tpu.memory_space<vmem>>, vector<16x8xf32>
    tpu.vector_store %arg8[%c0_17, %c0_18], %24 {strides = array<i32>} : memref<16x8xf32, #tpu.memory_space<vmem>>, vector<16x8xf32>,
    return
  }
  func.func @transform_0(%arg0: i32) -> (i32, i32) {
    %c0_i32 = arith.constant 0 : i32
    %c0_i32_0 = arith.constant 0 : i32
    return %arg0, %c0_i32 : i32, i32
  }
  func.func @transform_1(%arg0: i32) -> (i32, i32) {
    %c0_i32 = arith.constant 0 : i32
    %c0_i32_0 = arith.constant 0 : i32
    %c0_i32_1 = arith.constant 0 : i32
    return %c0_i32, %c0_i32_0 : i32, i32
  }
  func.func @transform_2(%arg0: i32) -> (i32, i32) {
    %c0_i32 = arith.constant 0 : i32
    %c0_i32_0 = arith.constant 0 : i32
    %c0_i32_1 = arith.constant 0 : i32
    return %c0_i32, %c0_i32_0 : i32, i32
  }
  func.func @transform_3(%arg0: i32) -> (i32, i32) {
    %c0_i32 = arith.constant 0 : i32
    %c0_i32_0 = arith.constant 0 : i32
    %c0_i32_1 = arith.constant 0 : i32
    return %c0_i32, %c0_i32_0 : i32, i32
  }
  func.func @transform_4(%arg0: i32) -> (i32, i32) {
    %c0_i32 = arith.constant 0 : i32
    %c0_i32_0 = arith.constant 0 : i32
    %c0_i32_1 = arith.constant 0 : i32
    return %c0_i32, %c0_i32_0 : i32, i32
  }
  func.func @transform_5(%arg0: i32) -> (i32, i32) {
    %c0_i32 = arith.constant 0 : i32
    %c0_i32_0 = arith.constant 0 : i32
    %c0_i32_1 = arith.constant 0 : i32
    return %c0_i32, %c0_i32_0 : i32, i32
  }
  func.func @transform_6(%arg0: i32) -> (i32, i32) {
    %c0_i32 = arith.constant 0 : i32
    %c0_i32_0 = arith.constant 0 : i32
    %c0_i32_1 = arith.constant 0 : i32
    return %c0_i32, %c0_i32_0 : i32, i32
  }
  func.func @transform_7(%arg0: i32) -> (i32, i32) {
    %c0_i32 = arith.constant 0 : i32
    %c0_i32_0 = arith.constant 0 : i32
    return %c0_i32, %arg0 : i32, i32
  }
}

</mosaic_0001>

<bundles_post_ra>
// kernel: tpu_custom_call.1
= control target key start
LH: loop header
LB: loop body
LE: loop exit
PB: predicated region body
PF: predicated region fallthrough
CT: control target
= control target key end

     0   :  { %12 = vsyncpa [#allocation3], 0  ;;  %s635_s0 = inlined_call_operand.vmem [shape: f32[8,64], index: 0, kind: input, shape index: {}]   ;;  %s636_s1 = inlined_call_operand.hbm [shape: bf16[64,256], index: 1, kind: input, shape index: {}]   ;;  %s637_s2 = inlined_call_operand.vmem [shape: f32[1,256], index: 2, kind: input, shape index: {}]   ;;  %s638_s3 = inlined_call_operand.hbm [shape: bf16[256,128], index: 3, kind: input, shape index: {}]   ;;  %s639_s4 = inlined_call_operand.vmem [shape: f32[1,128], index: 4, kind: input, shape index: {}]   ;;  %s640_s5 = inlined_call_operand.vmem [shape: bf16[16,128], index: 5, kind: input, shape index: {}]   ;;  %s641_s6 = inlined_call_operand.vmem [shape: f32[16,1], index: 6, kind: input, shape index: {}]   ;;  %s642_s7 = inlined_call_operand.vmem [shape: f32[16,8], index: 7, kind: output, shape index: {}]  }
   0x1   :  { %13 = vsyncpa [#allocation5], 0  ;;  %s556_s24 = smov [#allocation2]  }
   0x2   :  { %s21_s25 = sshll.u32 %s556_s24, 4  ;;  %s22_s25 = int_to_ptr.vmem [resolvable:$true] %s21_s25 }
   0x3   :  { %s520_s26 = scalar_lea.vmem %s22_s25, 1024  ;;  %p525_p1 = scmp.lt.s32.totalorder %s22_s25, %s22_s25 }
   0x4   :  { %p521_p0 = scmp.ne.s32.totalorder %s22_s25, %s520_s26  ;;  %p526_p2 = scmp.lt.s32.totalorder %s520_s26, %s520_s26 }
   0x6   :  { %p527_p3 = por %p526_p2, %p525_p1 }
   0x8   :  { %p528_p4 = pnand %p527_p3, %p521_p0 }
   0xa   :  { %531 = shalt.err (!%p528_p4)
}
   0xb   :  { %s557_s27 = smov 128   ;;  %s558_s28 = smov 8  }
   0xc   :  { %27 = dma.hbm_to_vmem [thread:$0]  %s636_s1, 1024, %s22_s25, [#allocation3], %s557_s27, %s557_s27, %s558_s28  }
   0xd   :  { %s559_s8 = smov [#allocation4]  }
   0xe   :  { %s35_s9 = sshll.u32 %s559_s8, 4  ;;  %s36_s9 = int_to_ptr.vmem [resolvable:$true] %s35_s9 }
   0xf   :  { %s540_s10 = scalar_lea.vmem %s36_s9, 2048  ;;  %p545_p6 = scmp.lt.s32.totalorder %s36_s9, %s36_s9 }
  0x10   :  { %p541_p5 = scmp.ne.s32.totalorder %s36_s9, %s540_s10  ;;  %p546_p7 = scmp.lt.s32.totalorder %s540_s10, %s540_s10 }
  0x12   :  { %p547_p8 = por %p546_p7, %p545_p6 }
  0x14   :  { %p548_p9 = pnand %p547_p8, %p541_p5 }
  0x16   :  { %551 = shalt.err (!%p548_p9)
}
  0x17   :  { %s560_s11 = smov 64   ;;  %s561_s12 = smov 4  }
  0x18   :  { %41 = dma.hbm_to_vmem [thread:$0]  %s638_s3, 2048, %s36_s9, [#allocation5], %s560_s11, %s560_s11, %s561_s12  }
  0x19   :  { %552 = dma.done.wait [#allocation3], 1024  }
  0x1a   :  { %553 = vsyncadd [#allocation3], 4294966272 }
  0x1b   :  { %554 = dma.done.wait [#allocation5], 2048  }
  0x1c   :  { %555 = vsyncadd [#allocation5], 4294965248  ;;  %v562_v0 = vmov 0   ;;  %v483_v1 = vld [vmem:[#allocation2 + $0x34] ss:$8 sps:$4 sm:$0xff]   ;;  %v499_v13 = vld [vmem:[#allocation4 + $0x68] sm:$0xff]   ;;  %v67_v27 = vlaneseq }
  0x1d   :  { %153 = vmatprep.mubr.bf16.mxu0 %v562_v0  ;;  %482 = vset.pattern.permute.xlu0 %v562_v0  ;;  %v485_v2 = vld [vmem:[#allocation2 + $0x30] ss:$8 sps:$4 sm:$0xff]   ;;  %v486_v3 = vld [vmem:[#allocation2 + $0x24] ss:$8 sps:$4 sm:$0xff]   ;;  %v488_v4 = vld [vmem:[#allocation2 + $0x20] ss:$8 sps:$4 sm:$0xff]  }
  0x1e   :  { %129 = vmatprep.subr.bf16.mxu0 %v483_v1  ;;  %v489_v5 = vld [vmem:[#allocation2 + $0x14] ss:$8 sps:$4 sm:$0xff]   ;;  %v491_v6 = vld [vmem:[#allocation2 + $0x10] ss:$8 sps:$4 sm:$0xff]   ;;  %v492_v7 = vld [vmem:[#allocation2 + $0x4] ss:$8 sps:$4 sm:$0xff]  }
  0x1f   :  { %130 = vmatpush1.bf16.msra.mxu0 %v485_v2  ;;  %v495_v8 = vld [vmem:[#allocation4 + $0x78] sm:$0xff]   ;;  %v497_v10 = vld [vmem:[#allocation4 + $0x70] sm:$0xff]   ;;  %v494_v11 = vld [vmem:[#allocation2] ss:$8 sps:$4 sm:$0xff]   ;;  %vm117_vm0 = vcmask 523264   ;;  %v68_v28 = vshrl.u32 %v67_v27, 7 }
  0x20   :  { %131 = vmatprep.subr.bf16.mxu0 %v486_v3  ;;  %v496_v9 = vld [vmem:[#allocation4 + $0x38] sm:$0xff]   ;;  %443 = vmatprep.subr.bf16.mxu1 %v495_v8  ;;  %v498_v12 = vld [vmem:[#allocation4 + $0x30] sm:$0xff]   ;;  %v55_v14 = vld [vmem:[%s635_s0] sm:$0xff]  ;;  %v563_v46 = vmov 0.0   ;;  %vm564_vm1 = vmmov 0   ;;  %vm407_vm2 = vcmask 64512  }
  0x21   :  { %444 = vmatpush3.bf16.msra.mxu1 %v496_v9  ;;  %v500_v15 = vld [vmem:[#allocation4 + $0x28] sm:$0xff]   ;;  %v56_v16 = vpack.c.bf16 %v55_v14, %v55_v14  ;;  %v501_v17 = vld [vmem:[#allocation4 + $0x60] sm:$0xff]   ;;  %v503_v19 = vld [vmem:[#allocation4 + $0x58] sm:$0xff]   ;;  %v69_v29 = vsub.s32 0, %v68_v28  ;;  %v73_v31 = vsub.s32 1, %v68_v28 }
  0x22   :  { %445 = vmatprep.subr.bf16.mxu1 %v497_v10  ;;  %v502_v18 = vld [vmem:[#allocation4 + $0x20] sm:$0xff]   ;;  %v504_v20 = vld [vmem:[#allocation4 + $0x18] sm:$0xff]   ;;  %v505_v21 = vld [vmem:[#allocation4 + $0x50] sm:$0xff]  }
  0x23   :  { %132 = vmatpush1.bf16.msra.mxu0 %v488_v4  ;;  %v506_v22 = vld [vmem:[#allocation4 + $0x10] sm:$0xff]   ;;  %v507_v23 = vld [vmem:[#allocation4 + $0x48] sm:$0xff]   ;;  %v509_v25 = vld [vmem:[#allocation4 + $0x40] sm:$0xff]  }
  0x24   :  { %133 = vmatprep.subr.bf16.mxu0 %v489_v5  ;;  %v508_v24 = vld [vmem:[#allocation4 + $0x8] sm:$0xff]   ;;  %v510_v26 = vld [vmem:[#allocation4] sm:$0xff]  }
  0x25   :  { %446 = vmatpush3.bf16.msra.mxu1 %v498_v12  ;;  %v65_v30 = vld [vmem:[%s637_s2] sm:$0x3]  ;;  %v349_v48 = vld [vmem:[%s641_s6 + $0x8] sm:$0xff] }
  0x26   :  { %447 = vmatprep.subr.bf16.mxu1 %v499_v13  ;;  %v70_v32 = vrot.slane %v65_v30, %v69_v29  ;;  %v74_v33 = vrot.slane %v65_v30, %v73_v31  ;;  %v348_v47 = vld [vmem:[%s641_s6] sm:$0xff] }
  0x27   :  { %134 = vmatpush1.bf16.msra.mxu0 %v491_v6  ;;  %352 = vperm.xlu0 %482, %v348_v47   ;;  %v425_v50 = vld [vmem:[%s639_s4] ss:$0 sm:$0xff] }
  0x28   :  { %135 = vmatprep.subr.bf16.mxu0 %v492_v7  ;;  %v511_v59 = vld [vmem:[%s640_s5] sm:$0xff]  }
  0x29   :  { %448 = vmatpush3.bf16.msra.mxu1 %v500_v15 }
  0x2a   :  { %449 = vmatprep.subr.bf16.mxu1 %v501_v17 }
  0x2b   :  { %136 = vmatpush1.bf16.msra.mxu0 %v494_v11  ;;  %357 = vperm.xlu0 %482, %v349_v48  }
  0x2c   :  { %467 = vmatprep.subr.bf16.mxu0 %v563_v46 }
  0x2d   :  { %450 = vmatpush3.bf16.msra.mxu1 %v502_v18 }
  0x2e   :  { %424 = vmatmul.mubr.msk.bf16.vlgmr.msra.gmra.mxu0 %vm117_vm0, %v56_v16  ;;  %451 = vmatprep.subr.bf16.mxu1 %v503_v19 }
  0x2f   :  { %469 = vmatprep.mubr.msk.bf16.mxu0 %vm564_vm1, %v563_v46 }
  0x31   :  { %452 = vmatpush3.bf16.msra.mxu1 %v504_v20 }
  0x32   :  { %453 = vmatprep.subr.bf16.mxu1 %v505_v21 }
  0x35   :  { %454 = vmatpush3.bf16.msra.mxu1 %v506_v22 }
  0x36   :  { %455 = vmatprep.subr.bf16.mxu1 %v507_v23 }
  0x39   :  { %456 = vmatpush3.bf16.msra.mxu1 %v508_v24 }
  0x3a   :  { %457 = vmatprep.subr.bf16.mxu1 %v509_v25 }
  0x3d   :  { %458 = vmatpush3.bf16.msra.mxu1 %v510_v26 }
  0xa2   :  { %v353_v60 = vpop.permute.xlu0 %352 }
  0xa6   :  { %v358_v0 = vpop.permute.xlu0 %357 }
  0xee   :  { %v155_v34 = vpop.f32.mrf.mxu0 }
  0xef   :  { %v156_v35 = vadd.f32 %v155_v34, %v70_v32 }
  0xf0   :  { %v157_v36 = vpop.f32.mrf.mxu0 }
  0xf1   :  { %v162_v37 = vadd.f32 2.0, %v156_v35  ;;  %v158_v38 = vadd.f32 %v157_v36, %v74_v33 }
  0xf2   :  { %v159_v39 = vpop.f32.mrf.mxu0 }
  0xf3   :  { %v163_v40 = vadd.f32 2.0, %v158_v38  ;;  %v164_v41 = vmul.f32 %v162_v37, %v156_v35 }
  0xf4   :  { %v160_v42 = vpop.f32.mrf.mxu0 }
  0xf5   :  { %v165_v43 = vmul.f32 %v163_v40, %v158_v38  ;;  %v166_v45 = vpack.c.bf16 %v164_v41, %v164_v41 }
  0xf7   :  { %v167_v44 = vpack.c.bf16 %v165_v43, %v165_v43 }
  0xf9   :  { %335 = vmatprep.mubr.bf16.mxu1 %v167_v44 }
  0xfa   :  { %336 = vmatmul.mubr.bf16.vlgmr.msra.gmra.mxu1 %v166_v45 }
 0x1ba   :  { %v459_v49 = vpop.f32.mrf.mxu1 }
 0x1bc   :  { %v460_v51 = vpop.f32.mrf.mxu1 }
 0x1bd   :  { %v461_v52 = vadd.f32 %v460_v51, %v459_v49 }
 0x1be   :  { %v462_v53 = vpop.f32.mrf.mxu1 }
 0x1bf   :  { %v338_v54 = vadd.f32 %v461_v52, %v425_v50 }
 0x1c0   :  { %v463_v55 = vpop.f32.mrf.mxu1 }
 0x1c1   :  { %v343_v56 = vadd.f32 2.0, %v338_v54 }
 0x1c3   :  { %v344_v57 = vmul.f32 %v343_v56, %v338_v54 }
 0x1c5   :  { %v345_v58 = vpack.c.bf16 %v344_v57, %v344_v57 }
 0x1c7   :  { %468 = vmatpush3.bf16.xpose.msra.mxu0 %v345_v58 }
 0x1ce   :  { %470 = vmatmul.mubr.bf16.vlgmr.msra.gmra.mxu0 %v511_v59 }
 0x28e   :  { %v400_v61 = vpop.f32.mrf.mxu0 }
 0x28f   :  { %v401_v62 = vadd.f32 %v400_v61, %v353_v60 }
 0x290   :  { %v471_v63 = vpop.f32.mrf.mxu0 }
 0x291   :  { %408 = vst.msk [vmem:[%s642_s7] sm:$0xff] %vm407_vm2, %v401_v62 }
 0x292   :  { %v403_v1 = vpop.f32.mrf.mxu0 }
 0x293   :  { %v404_v2 = vadd.f32 %v403_v1, %v358_v0 }
 0x294   :  { %v472_v3 = vpop.f32.mrf.mxu0 }
 0x295   :  { %409 = vst.msk [vmem:[%s642_s7 + $0x8] sm:$0xff] %vm407_vm2, %v404_v2 }
 0x296   :  { %414 = vsyncpa [#allocation3], 1 }
 0x297   :  { %415 = vsyncpa [#allocation5], 1 }

</bundles_post_ra>
